<compile_context>
chip_gen: v5e
topology: v5e:2x2
jax: 0.10.0
libtpu: 0.0.40
codegen_flags: <defaults>
</compile_context>

<pallas_src>
import math

import jax
import jax.numpy as jnp
from jax.experimental import pallas as pl
from jax.experimental.pallas import tpu as pltpu

ARC_FACE_EPS = 1e-10          # matches `arc_face_eps`
NORM_EPS = 1e-12              # F.normalize default eps


def _normalize_operands(w, x, radius, mxu_dtype):
    """F.normalize(dim=1, eps=1e-12) on both operands, radius folded into x.

    Done once in plain JAX so the kernel streams pre-normalized, pre-scaled,
    pre-cast tiles and does no per-step normalization work.  radius=64 is a
    power of two, so folding it before the bf16 cast does not change the
    quantization of the cosine values.
    """
    x32 = x.astype(jnp.float32)
    w32 = w.astype(jnp.float32)
    # x: [B, N, D] -> norm over N ; w: [B, D, C] -> norm over D (PyTorch default dim=1)
    x_inv = 1.0 / jnp.maximum(jnp.sqrt(jnp.sum(x32 * x32, axis=1, keepdims=True)), NORM_EPS)
    w_inv = 1.0 / jnp.maximum(jnp.sqrt(jnp.sum(w32 * w32, axis=1, keepdims=True)), NORM_EPS)
    xs = (x32 * x_inv * radius).astype(mxu_dtype)     # [B, N, D]  (radius folded in)
    wn = (w32 * w_inv).astype(mxu_dtype)              # [B, D, C]
    return xs, wn


def _pick_tiles(b, n, d, c, itemsize):
    """Pick (tile_n, tile_c, vmem_limit_bytes).

    Strategy: largest tn first (tn == N streams w from HBM once per batch),
    then the largest 128-aligned class tile that fits the VMEM budget.
    VMEM differs per generation (v5e/v6e: 128 MiB, v7x: 64 MiB per TensorCore);
    query it at trace time and fall back to the smallest (v7x) when unavailable.
    """
    try:
        vmem_cap = int(pltpu.get_tpu_info().vmem_capacity_bytes)
        if vmem_cap <= 0:
            raise ValueError(vmem_cap)
    except Exception:
        vmem_cap = 64 * 1024 * 1024                   # v7x per-TC (smallest generation)
    vmem_limit = min(vmem_cap * 3 // 4, 100 * 1024 * 1024)
    budget = vmem_limit - (4 << 20)                   # headroom for compiler scratch

    def cost(tn, tc):
        w_tile = 2 * d * tc * itemsize                # double-buffered weight tile (dominant)
        x_tile = 2 * tn * d * itemsize                # double-buffered x tile (resident per (b,n))
        logits = 2 * tn * tc * 4                      # f32 logits + exp intermediates
        small = 3 * tn * 4 + 4 * 2 * tn * 4           # accumulators, labels, per-row output
        return w_tile + x_tile + logits + small

    def aligned_divisors(dim, align):
        out = set()
        i = 1
        while i * i <= dim:
            if dim % i == 0:
                for v in (i, dim // i):
                    if v == dim or v % align == 0:
                        out.add(v)
            i += 1
        return sorted(out, reverse=True)

    tn_align = 8 if itemsize >= 4 else 16             # sublane packing for sub-32-bit x tiles
    tn_cands = aligned_divisors(n, tn_align) or [n]
    if b == 1:
        # Keep >= 2 parallel (b, n) tiles so both v7x TensorCores get work
        # (costs at most a 2x w re-stream; negligible for typical C >> N).
        multi = [t for t in tn_cands if t < n]
        if multi:
            tn_cands = multi
    tc_cands = aligned_divisors(c, 128)               # falls back to [C] when C < 128 etc.

    for tn in tn_cands:            # largest tn first: stream w once per batch when tn == N
        for tc in tc_cands:        # then the largest class tile that fits VMEM
            if cost(tn, tc) <= budget:
                return tn, tc, vmem_limit
    return tn_cands[-1], tc_cands[-1], vmem_limit


def arcface_loss(w, x, labels, *, radius=64.0, margin=0.5,
                 mxu_dtype=jnp.bfloat16, tile_n=None, tile_c=None):
    """ArcFace loss.  w: [B, D, C], x: [B, N, D], labels: [B, N] int class ids."""
    B, N, D = x.shape
    Bw, Dw, C = w.shape
    assert (Bw, Dw) == (B, D), (w.shape, x.shape)
    assert labels.shape == (B, N), labels.shape

    radius = float(radius)
    inv_radius = 1.0 / radius
    cos_m = float(math.cos(margin))
    sin_m = float(math.sin(margin))

    itemsize = jnp.dtype(mxu_dtype).itemsize
    # Hoisted normalization + radius fold + MXU-dtype cast (one cheap XLA pass).
    xs, wn = _normalize_operands(w, x, radius, mxu_dtype)
    labels3 = labels.astype(jnp.int32).reshape(B, N, 1)

    tn, tc, vmem_limit = _pick_tiles(B, N, D, C, itemsize)
    if tile_n is not None:
        tn = int(tile_n)
    if tile_c is not None:
        tc = int(tile_c)
    assert N % tn == 0 and (tn == N or tn % 8 == 0), (tn, N)
    assert C % tc == 0 and (tc == C or tc % 128 == 0), (tc, C)

    def _kernel(x_ref, w_ref, lbl_ref, o_ref, m_sc, l_sc, t_sc):
        c_idx = pl.program_id(2)
        blk_c = w_ref.shape[2]

        @pl.when(c_idx == 0)
        def _init():
            m_sc[...] = jnp.full(m_sc.shape, -jnp.inf, dtype=m_sc.dtype)
            l_sc[...] = jnp.zeros(l_sc.shape, dtype=l_sc.dtype)
            t_sc[...] = jnp.zeros(t_sc.shape, dtype=t_sc.dtype)

        # MXU: operands are pre-normalized (x pre-scaled by radius) and pre-cast
        # in the wrapper, so this directly produces radius * cosine-like logits.
        s = jnp.dot(x_ref[0], w_ref[0], preferred_element_type=jnp.float32)   # (tn, tc)

        # Target bookkeeping from integer labels.  The iota is loop-invariant;
        # the class-tile offset is folded into the (tn, 1) labels instead.
        lbl_local = lbl_ref[0] - c_idx * blk_c                        # (tn, 1) int32
        hit = jnp.logical_and(lbl_local >= 0, lbl_local < blk_c)      # (tn, 1) bool
        col = jax.lax.broadcasted_iota(jnp.int32, s.shape, 1)         # (tn, tc)
        mask = col == lbl_local                                       # (tn, tc) bool

        # ArcFace margin on the gathered target entry only (per-row math, f32).
        s_target = jnp.sum(jnp.where(mask, s, 0.0), axis=1, keepdims=True)    # R*cos(theta)
        cos_t = jnp.clip(s_target * inv_radius, -1.0 + ARC_FACE_EPS, 1.0 - ARC_FACE_EPS)
        # cos(arccos(c)+m) = c*cos(m) - sqrt(1-c^2)*sin(m)  (arccos in [0,pi] => sin >= 0)
        t_margin = radius * (cos_t * cos_m - jnp.sqrt(1.0 - cos_t * cos_t) * sin_m)
        t_sc[...] += jnp.where(hit, t_margin, 0.0)

        # Mixed logits: margin value at the target column, raw logit elsewhere.
        # Kept as a full-tile select on purpose: the subtract-and-correct
        # alternative cancels catastrophically when the target dominates.
        s_mixed = jnp.where(mask, t_margin, s)                        # (tn, tc)

        # Online max-subtracted logsumexp over the class axis (no exp overflow;
        # logits are NOT bounded in [-1,1] because of the dim=1 normalization).
        m_prev = m_sc[...]
        m_new = jnp.maximum(m_prev, jnp.max(s_mixed, axis=1, keepdims=True))
        l_sc[...] = (l_sc[...] * jnp.exp(m_prev - m_new)
                     + jnp.sum(jnp.exp(s_mixed - m_new), axis=1, keepdims=True))
        m_sc[...] = m_new

        @pl.when(c_idx == pl.num_programs(2) - 1)
        def _finalize():
            # per-row log( exp(target) / sum(exp) ) = R*cos(theta+m) - logsumexp
            o_ref[0] = t_sc[...] - (m_sc[...] + jnp.log(l_sc[...]))

    per_row = pl.pallas_call(
        _kernel,
        out_shape=jax.ShapeDtypeStruct((B, N, 1), jnp.float32),
        grid_spec=pltpu.PrefetchScalarGridSpec(
            num_scalar_prefetch=0,
            grid=(B, N // tn, C // tc),
            in_specs=[
                # x tile: block index constant across the inner class sweep -> one DMA per (b, n)
                pl.BlockSpec((1, tn, D), lambda b, n, c: (b, n, 0)),
                # w tile: streamed once per batch when tn == N (n is ignored).
                # TODO(synk): add pipeline_mode=pl.Buffered(3) here if a trace still
                #             shows exposed w DMA after the bf16 + once-per-batch change.
                pl.BlockSpec((1, D, tc), lambda b, n, c: (b, 0, c)),
                pl.BlockSpec((1, tn, 1), lambda b, n, c: (b, n, 0)),   # int labels
            ],
            out_specs=pl.BlockSpec((1, tn, 1), lambda b, n, c: (b, n, 0)),
            scratch_shapes=[
                pltpu.VMEM((tn, 1), jnp.float32),   # running max
                pltpu.VMEM((tn, 1), jnp.float32),   # running sum of exp
                pltpu.VMEM((tn, 1), jnp.float32),   # scaled target logit (numerator)
            ],
        ),
        compiler_params=pltpu.CompilerParams(
            dimension_semantics=("parallel", "parallel", "arbitrary"),
            vmem_limit_bytes=int(vmem_limit),
        ),
    )(xs, wn, labels3)

    # final reduction (glue): mean over all (b, n) entries
    return jnp.mean(per_row)


def arcface_loss_from_onehot(w, x, y, **kwargs):
    """Adapter matching the original module signature for one-hot `y`."""
    return arcface_loss(w, x, jnp.argmax(y, axis=-1).astype(jnp.int32), **kwargs)


def _reference(w, x, labels, *, radius=64.0, margin=0.5, mxu_dtype=jnp.float32):
    """Pure-JAX mirror of the PyTorch module (stable final log for one-hot y).

    Quantizes the matmul operands exactly the way the kernel does (normalize,
    fold radius into x, cast to `mxu_dtype`) so comparisons are apples-to-apples.
    For one-hot y: log(sum(exp*y)/sum(exp)) == mixed[target] - logsumexp(mixed),
    evaluated max-subtracted so exp(64 * logit) stays finite in f32.
    """
    C = w.shape[2]
    xs, wn = _normalize_operands(w, x, radius, mxu_dtype)
    xs = xs.astype(jnp.float32)
    wn = wn.astype(jnp.float32)
    logit_r = jnp.einsum("bnd,bdc->bnc", xs, wn, precision=jax.lax.Precision.HIGHEST)
    y = jax.nn.one_hot(labels, C, dtype=jnp.float32)
    cos_t = jnp.clip(logit_r * (1.0 / radius), -1.0 + ARC_FACE_EPS, 1.0 - ARC_FACE_EPS)
    target_r = radius * jnp.cos(jnp.arccos(cos_t) + margin)
    mixed = logit_r * (1.0 - y) + target_r * y
    s_target = jnp.sum(mixed * y, axis=2)
    loss = s_target - jax.nn.logsumexp(mixed, axis=2)
    return jnp.mean(loss)


if __name__ == "__main__":
    key = jax.random.PRNGKey(0)
    k1x, k1w, k1y, k2x, k2w, k2y = jax.random.split(key, 6)

    # --- small shape: whole problem fits in a single (tn, tc) tile ---
    B, N, D, C = 2, 8, 32, 16
    x = jax.random.normal(k1x, (B, N, D), dtype=jnp.float32)
    w = jax.random.normal(k1w, (B, D, C), dtype=jnp.float32)
    labels = jax.random.randint(k1y, (B, N), 0, C)

    # exact f32 MXU path vs f32 reference
    loss_f32 = jax.block_until_ready(arcface_loss(w, x, labels, mxu_dtype=jnp.float32))
    ref_f32 = jax.block_until_ready(_reference(w, x, labels, mxu_dtype=jnp.float32))
    assert bool(jnp.isfinite(loss_f32)), "non-finite loss (f32 path)"
    assert jnp.allclose(loss_f32, ref_f32, rtol=1e-3, atol=1e-3), (loss_f32, ref_f32)

    # default bf16-MXU path vs matched-precision reference
    loss_bf16 = jax.block_until_ready(arcface_loss(w, x, labels))
    ref_bf16 = jax.block_until_ready(_reference(w, x, labels, mxu_dtype=jnp.bfloat16))
    assert bool(jnp.isfinite(loss_bf16)), "non-finite loss (bf16 path)"
    assert jnp.allclose(loss_bf16, ref_bf16, rtol=2e-3, atol=2e-3), (loss_bf16, ref_bf16)

    # --- shape that exercises N- and C-tiling + the online logsumexp carry ---
    B2, N2, D2, C2 = 2, 16, 64, 256
    x2 = jax.random.normal(k2x, (B2, N2, D2), dtype=jnp.float32)
    w2 = jax.random.normal(k2w, (B2, D2, C2), dtype=jnp.float32)
    lbl2 = jax.random.randint(k2y, (B2, N2), 0, C2)
    y2 = jax.nn.one_hot(lbl2, C2, dtype=jnp.float32)   # original-module-style target

    # forced tiny tiles (f32) to exercise the accumulator carry across class tiles
    loss_tiled = jax.block_until_ready(
        arcface_loss_from_onehot(w2, x2, y2, mxu_dtype=jnp.float32, tile_n=8, tile_c=128))
    ref_tiled = jax.block_until_ready(_reference(w2, x2, lbl2, mxu_dtype=jnp.float32))
    assert bool(jnp.isfinite(loss_tiled)), "non-finite loss (tiled path)"
    assert jnp.allclose(loss_tiled, ref_tiled, rtol=1e-3, atol=1e-3), (loss_tiled, ref_tiled)

    # default auto-tiled bf16 path on the larger shape (tn == N, w streamed once/batch)
    loss_auto = jax.block_until_ready(arcface_loss(w2, x2, lbl2))
    ref_auto = jax.block_until_ready(_reference(w2, x2, lbl2, mxu_dtype=jnp.bfloat16))
    assert bool(jnp.isfinite(loss_auto)), "non-finite loss (auto bf16 path)"
    assert jnp.allclose(loss_auto, ref_auto, rtol=2e-3, atol=2e-3), (loss_auto, ref_auto)

    print("KERNEL_OK")
</pallas_src>

<mosaic_0001>
module attributes {stable_mosaic.version = 11 : i64} {
  func.func @_kernel(%arg0: i32, %arg1: i32, %arg2: i32, %arg3: memref<1x8x32xf32, #tpu.memory_space<vmem>>, %arg4: memref<1x32x16xf32, #tpu.memory_space<vmem>>, %arg5: memref<1x8x1xi32, #tpu.memory_space<vmem>>, %arg6: memref<1x8x1xf32, #tpu.memory_space<vmem>>, %arg7: memref<8x1xf32, #tpu.memory_space<vmem>>, %arg8: memref<8x1xf32, #tpu.memory_space<vmem>>, %arg9: memref<8x1xf32, #tpu.memory_space<vmem>>) attributes {dimension_semantics = [#tpu.dimension_semantics<parallel>, #tpu.dimension_semantics<parallel>, #tpu.dimension_semantics<arbitrary>], iteration_bounds = array<i64: 2, 1, 1>, scalar_prefetch = 0 : i64, scratch_operands = 3 : i64, tpu.core_type = #tpu.core_type<tc>, window_params = [{transform_indices = @transform_0, window_bounds = array<i64: 1, 8, 32>}, {transform_indices = @transform_1, window_bounds = array<i64: 1, 32, 16>}, {transform_indices = @transform_2, window_bounds = array<i64: 1, 8, 1>}, {transform_indices = @transform_3, window_bounds = array<i64: 1, 8, 1>}]} {
    %c0_i32 = arith.constant 0 : i32
    %0 = arith.cmpi eq, %arg2, %c0_i32 : i32
    %1 = arith.extui %0 : i1 to i32
    %c0_i32_0 = arith.constant 0 : i32
    %2 = arith.cmpi ne, %1, %c0_i32_0 : i32
    scf.if %2 {
      %cst_37 = arith.constant 0xFF800000 : f32
      %69 = vector.broadcast %cst_37 : f32 to vector<8x1xf32>
      %c0_38 = arith.constant 0 : index
      %c0_39 = arith.constant 0 : index
      %70 = vector.load %arg7[%c0_38, %c0_39] : memref<8x1xf32, #tpu.memory_space<vmem>>, vector<8x1xf32>
      tpu.vector_store %arg7[%c0_38, %c0_39], %69 {strides = array<i32>} : memref<8x1xf32, #tpu.memory_space<vmem>>, vector<8x1xf32>,
      %cst_40 = arith.constant 0.000000e+00 : f32
      %71 = vector.broadcast %cst_40 : f32 to vector<8x1xf32>
      %c0_41 = arith.constant 0 : index
      %c0_42 = arith.constant 0 : index
      %72 = vector.load %arg8[%c0_41, %c0_42] : memref<8x1xf32, #tpu.memory_space<vmem>>, vector<8x1xf32>
      tpu.vector_store %arg8[%c0_41, %c0_42], %71 {strides = array<i32>} : memref<8x1xf32, #tpu.memory_space<vmem>>, vector<8x1xf32>,
      %cst_43 = arith.constant 0.000000e+00 : f32
      %73 = vector.broadcast %cst_43 : f32 to vector<8x1xf32>
      %c0_44 = arith.constant 0 : index
      %c0_45 = arith.constant 0 : index
      %74 = vector.load %arg9[%c0_44, %c0_45] : memref<8x1xf32, #tpu.memory_space<vmem>>, vector<8x1xf32>
      tpu.vector_store %arg9[%c0_44, %c0_45], %73 {strides = array<i32>} : memref<8x1xf32, #tpu.memory_space<vmem>>, vector<8x1xf32>,
    } else {
    }
    %c0 = arith.constant 0 : index
    %c0_1 = arith.constant 0 : index
    %c0_2 = arith.constant 0 : index
    %3 = vector.load %arg3[%c0, %c0_1, %c0_2] : memref<1x8x32xf32, #tpu.memory_space<vmem>>, vector<1x8x32xf32>
    %4 = vector.shape_cast %3 : vector<1x8x32xf32> to vector<8x32xf32>
    %c0_3 = arith.constant 0 : index
    %c0_4 = arith.constant 0 : index
    %c0_5 = arith.constant 0 : index
    %5 = vector.load %arg4[%c0_3, %c0_4, %c0_5] : memref<1x32x16xf32, #tpu.memory_space<vmem>>, vector<1x32x16xf32>
    %6 = vector.shape_cast %5 : vector<1x32x16xf32> to vector<32x16xf32>
    %cst = arith.constant dense<0.000000e+00> : vector<8x16xf32>
    %7 = tpu.matmul %4, %6, %cst {dimension_numbers = #tpu.dot_dimension_numbers<[1], [0], [0], [1], [0, 0, 1, 1], [], []>} : vector<8x32xf32>, vector<32x16xf32>, vector<8x16xf32> -> vector<8x16xf32>
    %c0_6 = arith.constant 0 : index
    %c0_7 = arith.constant 0 : index
    %c0_8 = arith.constant 0 : index
    %8 = vector.load %arg5[%c0_6, %c0_7, %c0_8] : memref<1x8x1xi32, #tpu.memory_space<vmem>>, vector<1x8x1xi32>
    %9 = vector.shape_cast %8 : vector<1x8x1xi32> to vector<8x1xi32>
    %c16_i32 = arith.constant 16 : i32
    %10 = arith.muli %arg2, %c16_i32 : i32
    %11 = vector.broadcast %10 : i32 to vector<8x1xi32>
    %12 = arith.subi %9, %11 : vector<8x1xi32>
    %c0_i32_9 = arith.constant 0 : i32
    %13 = vector.broadcast %c0_i32_9 : i32 to vector<8x1xi32>
    %14 = arith.cmpi sge, %12, %13 : vector<8x1xi32>
    %c16_i32_10 = arith.constant 16 : i32
    %15 = vector.broadcast %c16_i32_10 : i32 to vector<8x1xi32>
    %16 = arith.cmpi slt, %12, %15 : vector<8x1xi32>
    %17 = arith.andi %14, %16 : vector<8x1xi1>
    %18 = tpu.iota {dimensions = array<i32: 1>} : vector<8x16xi32>
    %19 = vector.broadcast %12 : vector<8x1xi32> to vector<8x16xi32>
    %20 = arith.cmpi eq, %18, %19 : vector<8x16xi32>
    %cst_11 = arith.constant 0.000000e+00 : f32
    %21 = vector.broadcast %cst_11 : f32 to vector<8x16xf32>
    %22 = arith.select %20, %7, %21 : vector<8x16xi1>, vector<8x16xf32>
    %cst_12 = arith.constant dense<0.000000e+00> : vector<8xf32>
    %23 = vector.multi_reduction <add>, %22, %cst_12 [1] : vector<8x16xf32> to vector<8xf32>
    %24 = vector.shape_cast %23 : vector<8xf32> to vector<8x1xf32>
    %cst_13 = arith.constant 1.562500e-02 : f32
    %25 = vector.broadcast %cst_13 : f32 to vector<8x1xf32>
    %26 = arith.mulf %24, %25 : vector<8x1xf32>
    %cst_14 = arith.constant -1.000000e+00 : f32
    %cst_15 = arith.constant 1.000000e+00 : f32
    %27 = vector.broadcast %cst_14 : f32 to vector<8x1xf32>
    %28 = arith.maximumf %27, %26 : vector<8x1xf32>
    %29 = vector.broadcast %cst_15 : f32 to vector<8x1xf32>
    %30 = arith.minimumf %29, %28 : vector<8x1xf32>
    %cst_16 = arith.constant 0.87758255 : f32
    %31 = vector.broadcast %cst_16 : f32 to vector<8x1xf32>
    %32 = arith.mulf %30, %31 : vector<8x1xf32>
    %33 = arith.mulf %30, %30 : vector<8x1xf32>
    %cst_17 = arith.constant 1.000000e+00 : f32
    %34 = vector.broadcast %cst_17 : f32 to vector<8x1xf32>
    %35 = arith.subf %34, %33 : vector<8x1xf32>
    %36 = math.sqrt %35 : vector<8x1xf32>
    %cst_18 = arith.constant 0.47942555 : f32
    %37 = vector.broadcast %cst_18 : f32 to vector<8x1xf32>
    %38 = arith.mulf %36, %37 : vector<8x1xf32>
    %39 = arith.subf %32, %38 : vector<8x1xf32>
    %cst_19 = arith.constant 6.400000e+01 : f32
    %40 = vector.broadcast %cst_19 : f32 to vector<8x1xf32>
    %41 = arith.mulf %40, %39 : vector<8x1xf32>
    %c0_20 = arith.constant 0 : index
    %c0_21 = arith.constant 0 : index
    %42 = vector.load %arg9[%c0_20, %c0_21] : memref<8x1xf32, #tpu.memory_space<vmem>>, vector<8x1xf32>
    %cst_22 = arith.constant 0.000000e+00 : f32
    %43 = vector.broadcast %cst_22 : f32 to vector<8x1xf32>
    %44 = arith.select %17, %41, %43 : vector<8x1xi1>, vector<8x1xf32>
    %45 = arith.addf %42, %44 : vector<8x1xf32>
    %c0_23 = arith.constant 0 : index
    %c0_24 = arith.constant 0 : index
    %46 = vector.load %arg9[%c0_23, %c0_24] : memref<8x1xf32, #tpu.memory_space<vmem>>, vector<8x1xf32>
    tpu.vector_store %arg9[%c0_23, %c0_24], %45 {strides = array<i32>} : memref<8x1xf32, #tpu.memory_space<vmem>>, vector<8x1xf32>,
    %47 = vector.shape_cast %41 : vector<8x1xf32> to vector<8x1xf32>
    %48 = vector.broadcast %47 : vector<8x1xf32> to vector<8x16xf32>
    %49 = arith.select %20, %48, %7 : vector<8x16xi1>, vector<8x16xf32>
    %c0_25 = arith.constant 0 : index
    %c0_26 = arith.constant 0 : index
    %50 = vector.load %arg7[%c0_25, %c0_26] : memref<8x1xf32, #tpu.memory_space<vmem>>, vector<8x1xf32>
    %cst_27 = arith.constant dense<0xFF800000> : vector<8xf32>
    %51 = vector.multi_reduction <maximumf>, %49, %cst_27 [1] : vector<8x16xf32> to vector<8xf32>
    %52 = vector.shape_cast %51 : vector<8xf32> to vector<8x1xf32>
    %53 = arith.maximumf %50, %52 : vector<8x1xf32>
    %c0_28 = arith.constant 0 : index
    %c0_29 = arith.constant 0 : index
    %54 = vector.load %arg8[%c0_28, %c0_29] : memref<8x1xf32, #tpu.memory_space<vmem>>, vector<8x1xf32>
    %55 = arith.subf %50, %53 : vector<8x1xf32>
    %56 = math.exp %55 : vector<8x1xf32>
    %57 = arith.mulf %54, %56 : vector<8x1xf32>
    %58 = vector.broadcast %53 : vector<8x1xf32> to vector<8x16xf32>
    %59 = arith.subf %49, %58 : vector<8x16xf32>
    %60 = math.exp %59 : vector<8x16xf32>
    %cst_30 = arith.constant dense<0.000000e+00> : vector<8xf32>
    %61 = vector.multi_reduction <add>, %60, %cst_30 [1] : vector<8x16xf32> to vector<8xf32>
    %62 = vector.shape_cast %61 : vector<8xf32> to vector<8x1xf32>
    %63 = arith.addf %57, %62 : vector<8x1xf32>
    %c0_31 = arith.constant 0 : index
    %c0_32 = arith.constant 0 : index
    %64 = vector.load %arg8[%c0_31, %c0_32] : memref<8x1xf32, #tpu.memory_space<vmem>>, vector<8x1xf32>
    tpu.vector_store %arg8[%c0_31, %c0_32], %63 {strides = array<i32>} : memref<8x1xf32, #tpu.memory_space<vmem>>, vector<8x1xf32>,
    %c0_33 = arith.constant 0 : index
    %c0_34 = arith.constant 0 : index
    %65 = vector.load %arg7[%c0_33, %c0_34] : memref<8x1xf32, #tpu.memory_space<vmem>>, vector<8x1xf32>
    tpu.vector_store %arg7[%c0_33, %c0_34], %53 {strides = array<i32>} : memref<8x1xf32, #tpu.memory_space<vmem>>, vector<8x1xf32>,
    %c0_i32_35 = arith.constant 0 : i32
    %66 = arith.cmpi eq, %arg2, %c0_i32_35 : i32
    %67 = arith.extui %66 : i1 to i32
    %c0_i32_36 = arith.constant 0 : i32
    %68 = arith.cmpi ne, %67, %c0_i32_36 : i32
    scf.if %68 {
      %c0_37 = arith.constant 0 : index
      %c0_38 = arith.constant 0 : index
      %69 = vector.load %arg9[%c0_37, %c0_38] : memref<8x1xf32, #tpu.memory_space<vmem>>, vector<8x1xf32>
      %c0_39 = arith.constant 0 : index
      %c0_40 = arith.constant 0 : index
      %70 = vector.load %arg7[%c0_39, %c0_40] : memref<8x1xf32, #tpu.memory_space<vmem>>, vector<8x1xf32>
      %c0_41 = arith.constant 0 : index
      %c0_42 = arith.constant 0 : index
      %71 = vector.load %arg8[%c0_41, %c0_42] : memref<8x1xf32, #tpu.memory_space<vmem>>, vector<8x1xf32>
      %72 = math.log %71 : vector<8x1xf32>
      %73 = arith.addf %70, %72 : vector<8x1xf32>
      %74 = arith.subf %69, %73 : vector<8x1xf32>
      %c0_43 = arith.constant 0 : index
      %c0_44 = arith.constant 0 : index
      %c0_45 = arith.constant 0 : index
      %75 = vector.load %arg6[%c0_43, %c0_44, %c0_45] : memref<1x8x1xf32, #tpu.memory_space<vmem>>, vector<1x8x1xf32>
      %76 = vector.shape_cast %75 : vector<1x8x1xf32> to vector<8x1xf32>
      %77 = vector.shape_cast %74 : vector<8x1xf32> to vector<1x8x1xf32>
      tpu.vector_store %arg6[%c0_43, %c0_44, %c0_45], %77 {strides = array<i32>} : memref<1x8x1xf32, #tpu.memory_space<vmem>>, vector<1x8x1xf32>,
    } else {
    }
    return
  }
  func.func @transform_0(%arg0: i32, %arg1: i32, %arg2: i32) -> (i32, i32, i32) {
    %c0_i32 = arith.constant 0 : i32
    %c0_i32_0 = arith.constant 0 : i32
    return %arg0, %arg1, %c0_i32 : i32, i32, i32
  }
  func.func @transform_1(%arg0: i32, %arg1: i32, %arg2: i32) -> (i32, i32, i32) {
    %c0_i32 = arith.constant 0 : i32
    %c0_i32_0 = arith.constant 0 : i32
    return %arg0, %c0_i32, %arg2 : i32, i32, i32
  }
  func.func @transform_2(%arg0: i32, %arg1: i32, %arg2: i32) -> (i32, i32, i32) {
    %c0_i32 = arith.constant 0 : i32
    %c0_i32_0 = arith.constant 0 : i32
    return %arg0, %arg1, %c0_i32 : i32, i32, i32
  }
  func.func @transform_3(%arg0: i32, %arg1: i32, %arg2: i32) -> (i32, i32, i32) {
    %c0_i32 = arith.constant 0 : i32
    %c0_i32_0 = arith.constant 0 : i32
    return %arg0, %arg1, %c0_i32 : i32, i32, i32
  }
}

</mosaic_0001>

<bundles_post_ra>
// kernel: tpu_custom_call.1
= control target key start
LH: loop header
LB: loop body
LE: loop exit
PB: predicated region body
PF: predicated region fallthrough
CT: control target
= control target key end

     0   :  { %s589_s12 = smov 0   ;;  %s591_s13 = smov 0   ;;  %s645_s0 = inlined_call_operand.vmem [shape: f32[2,8,32], index: 0, kind: input, shape index: {}]   ;;  %s646_s1 = inlined_call_operand.vmem [shape: f32[2,32,16], index: 1, kind: input, shape index: {}]   ;;  %s647_s2 = inlined_call_operand.vmem [shape: s32[2,8,1], index: 2, kind: input, shape index: {}]   ;;  %s648_s3 = inlined_call_operand.vmem [shape: f32[2,8,1], index: 3, kind: output, shape index: {}]  }
   0x1   :  { %s593_s14 = smov 0  }
   0x2 LB: > { %s32_s15 = sadd.s32 1, %s560_s13  ;;  %p494_p0 = scmp.ge.s32.totalorder %s564_s14, 1  ;;  %s564_s14 = sphi %s593_s14, %s13_s14   ;;  %s560_s13 = sphi %s591_s13, %s650_s13   ;;  %s556_s12 = sphi %s589_s12, %s649_s12  }
   0x3   : > { %p34_p1 = scmp.ge.s32.totalorder %s32_s15, 2  ;;  %p191_p2 = scmp.lt.s32.totalorder %s564_s14, 3 }
   0x5   : > { %s652_s15 = smov (%p34_p1, %s32_s15), 0  ;;  %p192_p3 = pnand %p494_p0, %p191_p2 }
   0x6   : > { %p234_p4 = scmp.lt.s32.totalorder (!%p192_p3), %s556_s12, 1 }
   0x7   : > { %195 = sbr.rel (%p192_p3) target bundleno = 689 (0x2b1), region = 32 }
   0xc   : > { %v566_v0 = vmov 0   ;;  %s654_s12 = smov (!%p234_p4, %s556_s12), 1  ;;  %vm276_vm0 = vcmask 261120   ;;  %vm267_vm1 = vcmask 7168   ;;  %v567_v7 = vmov 0.0  }
   0xd   : > { %532 = vset.pattern.permute.xlu0 %v566_v0  ;;  %533 = vset.pattern.permute.xlu1 %v566_v0  ;;  %s504_s16 = sshll.u32 %s654_s12, 5  ;;  %s610_s20 = sshll.u32 %s654_s12, 3  ;;  %270 = vst.msk [vmem:[#allocation4] sm:$0xff] %vm267_vm1, %v567_v7  ;;  %v307_v8 = vlaneseq  ;;  %vm314_vm3 = vcmask 130048   ;;  %v568_v20 = vmov -inf  }
   0xe   : > { %s248_s19 = scalar_lea.vmem %s646_s1, %s504_s16  ;;  %s255_s23 = scalar_lea.vmem %s647_s2, %s610_s20  ;;  %269 = vst.msk [vmem:[#allocation3] sm:$0xff] %vm267_vm1, %v567_v7 }
   0xf   : > { %v275_v1 = vld [vmem:[%s248_s19 + $0x18] sm:$0xff]  ;;  %v274_v2 = vld [vmem:[%s248_s19 + $0x10] sm:$0xff]  ;;  %v300_v3 = vld [vmem:[%s255_s23] sm:$0xff]  ;;  %s240_s26 = scalar_lea.vmem %s645_s0, %s610_s20  ;;  %v308_v9 = vand.u32 127, %v307_v8  ;;  %268 = vst.msk [vmem:[#allocation2] sm:$0xff] %vm267_vm1, %v568_v20  ;;  %s262_s29 = scalar_lea.vmem %s648_s3, %s610_s20 }
  0x10   : > { %292 = vmatpush.msra.mxu0 %v275_v1  ;;  %v273_v4 = vld [vmem:[%s248_s19 + $0x8] sm:$0xff]  ;;  %310 = vperm.xlu0 %532, %v300_v3   ;;  %v272_v5 = vld [vmem:[%s248_s19] sm:$0xff]  ;;  %vm304_vm6 = vcmp.ge.s32.totalorder %v300_v3, 0  ;;  %vm305_vm7 = vcmp.lt.s32.totalorder %v300_v3, 16 }
  0x11   : > { %v271_v6 = vld [vmem:[%s240_s26] sm:$0xff]  ;;  %vm306_vm8 = vmand %vm304_vm6, %vm305_vm7 }
  0x12   : > { %293 = vmatpush.msra.mxu0 %v274_v2 }
  0x14   : > { %294 = vmatpush.msra.mxu0 %v273_v4  ;;  %v339_v33 = vld [vmem:[#allocation4] sm:$0xff] }
  0x15   : > { %v350_v50 = vld [vmem:[#allocation3] sm:$0xff] }
  0x16   : > { %295 = vmatpush.msra.mxu0 %v272_v5  ;;  %v345_v39 = vld [vmem:[#allocation2] sm:$0xff] }
  0x17   : > { %500 = vmatmul.msk.f32.vlgmr.msra.gmra.mxu0 %vm276_vm0, %v271_v6 }
  0x82   : > { %v311_v10 = vpop.permute.xlu0 %310 }
  0x83   : > { %vm312_vm2 = vcmp.eq.s32.totalorder %v308_v9, %v311_v10 }
  0x94   : > { %v297_v11 = vpop.f32.mrf.mxu0 }
  0x95   : > { %v313_v12 = vsel %vm312_vm2, %v297_v11, 0.0 }
  0x96   : > { %v315_v13 = vsel %vm314_vm3, %v313_v12, 0.0 }
  0x97   : > { %316 = vadd.xlane.f32.xlu0 %v315_v13 }
 0x10a   : > { %v317_v14 = vpop.xlane.xlu0 %316 }
 0x10b   : > { %v318_v15 = vmul.f32 0.015625, %v317_v14 }
 0x10d   : > { %v501_v16 = vclamps-f32 %v318_v15, 1.0 }
 0x10f   : > { %v322_v17 = vmul.f32 %v501_v16, %v501_v16  ;;  %v321_v30 = vmul.f32 0.87758255, %v501_v16 }
 0x111   : > { %v323_v18 = vsub.f32 1.0, %v322_v17 }
 0x113   : > { %534 = vrsqrt.f32 %v323_v18  ;;  %vm331_vm4 = vcmp.eq.f32.partialorder %v323_v18, inf  ;;  %v334_v27 = vand.u32 2147483648, %v323_v18  ;;  %vm333_vm5 = vcmp.eq.f32.partialorder %v323_v18, 0.0 }
 0x119   : > { %v535_v19 = vpop.eup %534 }
 0x11a   : > { %v325_v21 = vmul.f32 %v535_v19, %v323_v18 }
 0x11c   : > { %v326_v22 = vmul.f32 %v535_v19, %v325_v21 }
 0x11e   : > { %v327_v23 = vmul.f32 0.5, %v326_v22 }
 0x120   : > { %v328_v24 = vsub.f32 1.5, %v327_v23 }
 0x122   : > { %v329_v25 = vmul.f32 %v535_v19, %v328_v24 }
 0x124   : > { %v330_v26 = vmul.f32 %v329_v25, %v323_v18 }
 0x126   : > { %v332_v28 = vsel %vm331_vm4, %v323_v18, %v330_v26 }
 0x127   : > { %v335_v29 = vsel %vm333_vm5, %v334_v27, %v332_v28 }
 0x128   : > { %v336_v31 = vmul.f32 0.47942555, %v335_v29 }
 0x12a   : > { %v337_v32 = vsub.f32 %v321_v30, %v336_v31 }
 0x12c   : > { %v338_v34 = vmul.f32 64.0, %v337_v32 }
 0x12e   : > { %v340_v35 = vsel %vm306_vm8, %v338_v34, 0.0  ;;  %v344_v36 = vsel %vm312_vm2, %v338_v34, %v297_v11 }
 0x12f   : > { %v341_v37 = vadd.f32 %v340_v35, %v339_v33  ;;  %v346_v38 = vsel %vm314_vm3, %v344_v36, -inf }
 0x130   : > { %347 = vmax.xlane.f32.xlu1 %v346_v38 }
 0x131   : > { %343 = vst.msk [vmem:[#allocation4] sm:$0xff] %vm267_vm1, %v341_v37 }
 0x138   : > { %v372_v59 = vld [vmem:[#allocation4] sm:$0xff] }
 0x1a3   : > { %v348_v40 = vpop.xlane.xlu1 %347 }
 0x1a4   : > { %v349_v41 = vmax.f32 %v345_v39, %v348_v40 }
 0x1a6   : > { %v351_v42 = vsub.f32 %v345_v39, %v349_v41  ;;  %368 = vst.msk [vmem:[#allocation2] sm:$0xff] %vm267_vm1, %v349_v41  ;;  %357 = vperm.xlu1 %533, %v349_v41  }
 0x1a8   : > { %v352_v48 = vmul.f32 1.442695, %v351_v42 }
 0x1ad   : > { %v373_v57 = vld [vmem:[#allocation2] sm:$0xff] }
 0x218   : > { %v358_v43 = vpop.permute.xlu1 %357 }
 0x219   : > { %v360_v44 = vsub.f32 %v344_v36, %v358_v43 }
 0x21b   : > { %v361_v45 = vmul.f32 1.442695, %v360_v44 }
 0x21d   : > { %536 = vpow2.f32 %v361_v45 }
 0x21e   : > { %538 = vpow2.f32 %v352_v48 }
 0x223   : > { %v537_v46 = vpop.eup %536 }
 0x224   : > { %v363_v47 = vsel %vm314_vm3, %v537_v46, 0.0  ;;  %v539_v49 = vpop.eup %538 }
 0x225   : > { %364 = vadd.xlane.f32.xlu2 %v363_v47  ;;  %v354_v51 = vmul.f32 %v539_v49, %v350_v50 }
 0x298   : > { %v365_v52 = vpop.xlane.xlu2 %364 }
 0x299   : > { %v366_v53 = vadd.f32 %v365_v52, %v354_v51 }
 0x29b   : > { %367 = vst.msk [vmem:[#allocation3] sm:$0xff] %vm267_vm1, %v366_v53 }
 0x2a2   : > { %v374_v54 = vld [vmem:[#allocation3] sm:$0xff] }
 0x2a3   : > { %540 = vlog2.f32 %v374_v54 }
 0x2a9   : > { %v541_v55 = vpop.eup %540 }
 0x2aa   : > { %v376_v56 = vmul.f32 0.6931472, %v541_v55 }
 0x2ac   : > { %v377_v58 = vadd.f32 %v376_v56, %v373_v57 }
 0x2ae   : > { %v378_v60 = vsub.f32 %v372_v59, %v377_v58 }
 0x2b0   : > { %379 = vst.msk [vmem:[%s262_s29] sm:$0xff] %vm267_vm1, %v378_v60 }
 0x2b1 PF: > { %s13_s14 = sadd.s32 1, %s564_s14   ;;  %s649_s12 = smov %s560_s13 }
 0x2b2   : > { %p10_p5 = scmp.ge.s32.totalorder %s13_s14, 4   ;;  %s650_s13 = smov %s652_s15 }
 0x2b4   :  { %12 = sbr.rel (!%p10_p5) target bundleno = 2 (0x2), region = 76 }

</bundles_post_ra>
